<compile_context>
chip_gen: v5e
topology: v5e:2x2
jax: 0.10.0
libtpu: 0.0.40
codegen_flags: <defaults>
</compile_context>

<pallas_src>
import functools
import math

import jax
import jax.numpy as jnp
from jax.experimental import pallas as pl
from jax.experimental.pallas import tpu as pltpu

_LANE = 128
_SUBLANE = 8


def _round_up(x, m):
    return ((x + m - 1) // m) * m


def _make_conv1d_kernel(kernel_size: int, dilation: int, stride: int,
                        has_halo: bool):
    """Build a Pallas kernel body with static conv hyper-parameters baked in."""

    def body(x_ref, h_ref, w_ref, b_ref, o_ref):
        # x_ref: (1, C_in_pad, TT*stride)          main input window   (VMEM)
        # h_ref: (1, C_in_pad, HALO_PAD) | None    right halo window   (VMEM)
        # w_ref: (C_out, K*C_in_pad)               fused-tap weights   (VMEM)
        # b_ref: (C_out, 1)                        bias                (VMEM)
        # o_ref: (1, C_out, TT)                    output tile (time on lanes)
        t_tile = o_ref.shape[-1]
        xw = x_ref[0]
        if has_halo:
            xw = jnp.concatenate([xw, h_ref[0]], axis=-1)

        taps = []
        for k in range(kernel_size):
            start = k * dilation
            if stride == 1:
                taps.append(xw[:, start:start + t_tile])
            else:
                # TODO(synk): stride > 1 uses a strided lane slice; functional
                # but untuned (wavenet's Conv always uses stride=1).
                limit = start + (t_tile - 1) * stride + 1
                taps.append(
                    jax.lax.slice(xw, (0, start), (xw.shape[0], limit),
                                  (1, stride)))
        x_all = taps[0] if kernel_size == 1 else jnp.concatenate(taps, axis=0)

        # Single fused MXU matmul over (k, ci); f32 accumulation.
        out = jnp.dot(w_ref[...], x_all, preferred_element_type=jnp.float32)
        out = out + b_ref[...]                      # (C_out, 1) broadcast
        o_ref[0] = out.astype(o_ref.dtype)

    if has_halo:
        return body
    return lambda x_ref, w_ref, b_ref, o_ref: body(x_ref, None, w_ref, b_ref,
                                                   o_ref)


def _choose_time_tile(t_out, c_in_pad, c_out, kernel_size, stride, halo_pad):
    """Largest lane-aligned time tile that keeps VMEM usage modest (fits v7x's
    64 MiB/TensorCore with headroom; also fine for v5e's 16 MiB scoped default)."""
    per_tt = 4 * (3 * c_in_pad * stride          # 2x dbl-buffered window + copy
                  + 3 * c_out                    # 2x output bufs + dot result
                  + kernel_size * c_in_pad)      # fused matmul operand
    budget = 8 * 1024 * 1024
    tt = (budget // max(per_tt, 1)) // _LANE * _LANE
    tt = max(_LANE, min(tt, 1024))
    tt = min(tt, _round_up(t_out, _LANE))        # don't tile past the sequence
    if halo_pad:
        tt = _round_up(tt, halo_pad)             # keep halo block index integral
    return max(tt, _LANE)


def conv_forward(
    signal,             # (N, C_in, T)      -- PyTorch NCT layout
    weight,             # (C_out, C_in, K)  -- PyTorch Conv1d weight layout
    bias=None,          # (C_out,) or None
    *,
    kernel_size: int,
    stride: int = 1,
    dilation: int = 1,
    is_causal: bool = False,
    time_tile: int | None = None,
):
    n, c_in, t = signal.shape
    c_out = weight.shape[0]
    k = kernel_size
    assert weight.shape == (c_out, c_in, k), weight.shape
    if bias is None:
        bias = jnp.zeros((c_out,), signal.dtype)

    halo = (k - 1) * dilation
    pad_left = halo if is_causal else 0
    t_in = t + pad_left
    t_out = (t_in - halo - 1) // stride + 1
    assert t_out >= 1, "input too short for this kernel/dilation"

    c_in_pad = _round_up(c_in, _SUBLANE)
    halo_pad = _round_up(halo, _LANE) if halo > 0 else 0
    has_halo = halo_pad > 0

    tt = (time_tile if time_tile is not None
          else _choose_time_tile(t_out, c_in_pad, c_out, k, stride, halo_pad))
    tt = _round_up(tt, _LANE)
    if halo_pad:
        tt = _round_up(tt, halo_pad)
    num_tiles = pl.cdiv(t_out, tt)

    # One fused zero-pad: causal left pad, right pad so every tile window and
    # its halo are in-bounds, channel pad to a sublane multiple.
    l_pad = num_tiles * tt * stride + halo_pad
    x_p = jnp.pad(signal, ((0, 0), (0, c_in_pad - c_in),
                           (pad_left, l_pad - t_in)))

    # Fused-tap weight: (C_out, K*C_in_pad), row index = k*C_in_pad + ci.
    w_all = jnp.transpose(weight, (0, 2, 1))               # (C_out, K, C_in)
    w_all = jnp.pad(w_all, ((0, 0), (0, 0), (0, c_in_pad - c_in)))
    w_all = w_all.reshape(c_out, k * c_in_pad)
    b2 = bias.reshape(c_out, 1)

    kernel = _make_conv1d_kernel(k, dilation, stride, has_halo)

    in_specs = [pl.BlockSpec((1, c_in_pad, tt * stride),
                             lambda b, j: (b, 0, j))]
    args = [x_p]
    if has_halo:
        ratio = (tt * stride) // halo_pad
        in_specs.append(pl.BlockSpec((1, c_in_pad, halo_pad),
                                     lambda b, j: (b, 0, (j + 1) * ratio)))
        args.append(x_p)
    in_specs += [pl.BlockSpec((c_out, k * c_in_pad), lambda b, j: (0, 0)),
                 pl.BlockSpec((c_out, 1), lambda b, j: (0, 0))]
    args += [w_all, b2]

    itemsize = jnp.dtype(signal.dtype).itemsize
    vmem_est = 4 * (3 * c_in_pad * tt * stride + 2 * c_in_pad * halo_pad
                    + 3 * c_out * tt + 2 * c_out * k * c_in_pad
                    + k * c_in_pad * tt)
    cost = pl.CostEstimate(
        flops=2 * n * t_out * k * c_in * c_out,
        transcendentals=0,
        bytes_accessed=int(x_p.size * itemsize + w_all.size * itemsize
                           + c_out * itemsize + n * c_out * t_out * itemsize))

    return pl.pallas_call(
        kernel,
        out_shape=jax.ShapeDtypeStruct((n, c_out, t_out), signal.dtype),
        grid_spec=pltpu.PrefetchScalarGridSpec(
            num_scalar_prefetch=0,
            grid=(n, num_tiles),
            in_specs=in_specs,
            out_specs=pl.BlockSpec((1, c_out, tt), lambda b, j: (b, 0, j)),
        ),
        compiler_params=pltpu.CompilerParams(
            dimension_semantics=("parallel", "parallel"),
            vmem_limit_bytes=int(min(48 * 1024 * 1024,
                                     max(16 * 1024 * 1024, 3 * vmem_est))),
        ),
        cost_estimate=cost,
    )(*args)


def init_conv_params(key, in_channels, out_channels, kernel_size,
                     w_init_gain="linear"):
    """Parameter init matching the torch module.

    weight: xavier_uniform_ with gain = calculate_gain('linear') == 1.0
    bias:   torch Conv1d default: U(-1/sqrt(fan_in), 1/sqrt(fan_in))
    """
    gain = 1.0  # calculate_gain('linear')
    k_w, k_b = jax.random.split(key)
    fan_in = in_channels * kernel_size
    fan_out = out_channels * kernel_size
    w_bound = gain * math.sqrt(6.0 / (fan_in + fan_out))
    weight = jax.random.uniform(
        k_w, (out_channels, in_channels, kernel_size),
        minval=-w_bound, maxval=w_bound, dtype=jnp.float32)
    b_bound = 1.0 / math.sqrt(fan_in)
    bias = jax.random.uniform(
        k_b, (out_channels,), minval=-b_bound, maxval=b_bound,
        dtype=jnp.float32)
    return weight, bias


def _reference_conv(signal, weight, bias, *, kernel_size, stride, dilation,
                    is_causal):
    """Pure-JAX reference (lax.conv_general_dilated) for verification."""
    if is_causal:
        pad = (kernel_size - 1) * dilation
        signal = jnp.pad(signal, ((0, 0), (0, 0), (pad, 0)))
    out = jax.lax.conv_general_dilated(
        signal, weight,
        window_strides=(stride,),
        padding="VALID",
        rhs_dilation=(dilation,),
        dimension_numbers=("NCH", "OIH", "NCH"),
    )
    return out + bias[None, :, None]


if __name__ == "__main__":
    configs = [
        # name, batch, c_in, c_out, T, K, stride, dilation, causal, time_tile
        ("dilated_causal", 2, 4, 8, 16, 3, 1, 2, True, None),
        ("pointwise_1x1", 2, 4, 8, 16, 1, 1, 1, False, None),
        ("multi_tile_halo", 2, 4, 8, 300, 3, 1, 2, True, 128),
    ]
    key = jax.random.PRNGKey(0)
    for (name, batch, c_in, c_out, time, ksz, stride, dilation, causal,
         ttile) in configs:
        key, k_x, k_p = jax.random.split(key, 3)
        x = jax.random.normal(k_x, (batch, c_in, time), dtype=jnp.float32)
        weight, bias = init_conv_params(k_p, c_in, c_out, ksz)

        fwd = functools.partial(
            conv_forward, kernel_size=ksz, stride=stride, dilation=dilation,
            is_causal=causal, time_tile=ttile)
        out = jax.block_until_ready(jax.jit(fwd)(x, weight, bias))

        ref = _reference_conv(
            x, weight, bias, kernel_size=ksz, stride=stride,
            dilation=dilation, is_causal=causal)

        assert out.shape == ref.shape, (name, out.shape, ref.shape)
        err = float(jnp.max(jnp.abs(out - ref)))
        assert jnp.allclose(out, ref, atol=1e-4, rtol=1e-4), (name, err)

    print("KERNEL_OK")
</pallas_src>

<mosaic_0001>
module attributes {stable_mosaic.version = 11 : i64} {
  func.func @body(%arg0: i32, %arg1: i32, %arg2: memref<1x8x128xf32, #tpu.memory_space<vmem>>, %arg3: memref<1x8x128xf32, #tpu.memory_space<vmem>>, %arg4: memref<8x24xf32, #tpu.memory_space<vmem>>, %arg5: memref<8x1xf32, #tpu.memory_space<vmem>>, %arg6: memref<1x8x128xf32, #tpu.memory_space<vmem>>) attributes {dimension_semantics = [#tpu.dimension_semantics<parallel>, #tpu.dimension_semantics<parallel>], iteration_bounds = array<i64: 2, 1>, scalar_prefetch = 0 : i64, scratch_operands = 0 : i64, tpu.core_type = #tpu.core_type<tc>, window_params = [{transform_indices = @transform_0, window_bounds = array<i64: 1, 8, 128>}, {transform_indices = @transform_1, window_bounds = array<i64: 1, 8, 128>}, {pipeline_mode = #tpu.pipeline_mode<synchronous>, transform_indices = @transform_2, window_bounds = array<i64: 8, 24>}, {pipeline_mode = #tpu.pipeline_mode<synchronous>, transform_indices = @transform_3, window_bounds = array<i64: 8, 1>}, {transform_indices = @transform_4, window_bounds = array<i64: 1, 8, 128>}]} {
    %c0 = arith.constant 0 : index
    %c0_0 = arith.constant 0 : index
    %c0_1 = arith.constant 0 : index
    %0 = vector.load %arg2[%c0, %c0_0, %c0_1] : memref<1x8x128xf32, #tpu.memory_space<vmem>>, vector<1x8x128xf32>
    %1 = vector.shape_cast %0 : vector<1x8x128xf32> to vector<8x128xf32>
    %c0_2 = arith.constant 0 : index
    %c0_3 = arith.constant 0 : index
    %c0_4 = arith.constant 0 : index
    %2 = vector.load %arg3[%c0_2, %c0_3, %c0_4] : memref<1x8x128xf32, #tpu.memory_space<vmem>>, vector<1x8x128xf32>
    %3 = vector.shape_cast %2 : vector<1x8x128xf32> to vector<8x128xf32>
    %4 = tpu.concatenate %1, %3 in 1 : vector<8x128xf32>, vector<8x128xf32> -> vector<8x256xf32>
    %5 = vector.extract_strided_slice %4 {offsets = [0, 0], sizes = [8, 128], strides = [1, 1]} : vector<8x256xf32> to vector<8x128xf32>
    %6 = vector.extract_strided_slice %4 {offsets = [0, 2], sizes = [8, 128], strides = [1, 1]} : vector<8x256xf32> to vector<8x128xf32>
    %7 = vector.extract_strided_slice %4 {offsets = [0, 4], sizes = [8, 128], strides = [1, 1]} : vector<8x256xf32> to vector<8x128xf32>
    %8 = tpu.concatenate %5, %6, %7 in 0 : vector<8x128xf32>, vector<8x128xf32>, vector<8x128xf32> -> vector<24x128xf32>
    %c0_5 = arith.constant 0 : index
    %c0_6 = arith.constant 0 : index
    %9 = vector.load %arg4[%c0_5, %c0_6] : memref<8x24xf32, #tpu.memory_space<vmem>>, vector<8x24xf32>
    %cst = arith.constant dense<0.000000e+00> : vector<8x128xf32>
    %10 = tpu.matmul %9, %8, %cst {dimension_numbers = #tpu.dot_dimension_numbers<[1], [0], [0], [1], [0, 0, 1, 1], [], []>} : vector<8x24xf32>, vector<24x128xf32>, vector<8x128xf32> -> vector<8x128xf32>
    %c0_7 = arith.constant 0 : index
    %c0_8 = arith.constant 0 : index
    %11 = vector.load %arg5[%c0_7, %c0_8] : memref<8x1xf32, #tpu.memory_space<vmem>>, vector<8x1xf32>
    %12 = vector.broadcast %11 : vector<8x1xf32> to vector<8x128xf32>
    %13 = arith.addf %10, %12 : vector<8x128xf32>
    %c0_9 = arith.constant 0 : index
    %c0_10 = arith.constant 0 : index
    %c0_11 = arith.constant 0 : index
    %14 = vector.load %arg6[%c0_9, %c0_10, %c0_11] : memref<1x8x128xf32, #tpu.memory_space<vmem>>, vector<1x8x128xf32>
    %15 = vector.shape_cast %14 : vector<1x8x128xf32> to vector<8x128xf32>
    %16 = vector.shape_cast %13 : vector<8x128xf32> to vector<1x8x128xf32>
    tpu.vector_store %arg6[%c0_9, %c0_10, %c0_11], %16 {strides = array<i32>} : memref<1x8x128xf32, #tpu.memory_space<vmem>>, vector<1x8x128xf32>,
    return
  }
  func.func @transform_0(%arg0: i32, %arg1: i32) -> (i32, i32, i32) {
    %c0_i32 = arith.constant 0 : i32
    %c0_i32_0 = arith.constant 0 : i32
    return %arg0, %c0_i32, %arg1 : i32, i32, i32
  }
  func.func @transform_1(%arg0: i32, %arg1: i32) -> (i32, i32, i32) {
    %c1_i32 = arith.constant 1 : i32
    %0 = arith.addi %arg1, %c1_i32 : i32
    %c1_i32_0 = arith.constant 1 : i32
    %1 = arith.muli %0, %c1_i32_0 : i32
    %c0_i32 = arith.constant 0 : i32
    %c0_i32_1 = arith.constant 0 : i32
    return %arg0, %c0_i32, %1 : i32, i32, i32
  }
  func.func @transform_2(%arg0: i32, %arg1: i32) -> (i32, i32) {
    %c0_i32 = arith.constant 0 : i32
    %c0_i32_0 = arith.constant 0 : i32
    %c0_i32_1 = arith.constant 0 : i32
    return %c0_i32, %c0_i32_0 : i32, i32
  }
  func.func @transform_3(%arg0: i32, %arg1: i32) -> (i32, i32) {
    %c0_i32 = arith.constant 0 : i32
    %c0_i32_0 = arith.constant 0 : i32
    %c0_i32_1 = arith.constant 0 : i32
    return %c0_i32, %c0_i32_0 : i32, i32
  }
  func.func @transform_4(%arg0: i32, %arg1: i32) -> (i32, i32, i32) {
    %c0_i32 = arith.constant 0 : i32
    %c0_i32_0 = arith.constant 0 : i32
    return %arg0, %c0_i32, %arg1 : i32, i32, i32
  }
}

</mosaic_0001>

<bundles_post_ra>
// kernel: conv_forward.1
= control target key start
LH: loop header
LB: loop body
LE: loop exit
PB: predicated region body
PF: predicated region fallthrough
CT: control target
= control target key end

     0   :  { %9 = vsyncpa [#allocation3], 0  ;;  %s721_s0 = inlined_call_operand.vmem [shape: f32[2,8,256], index: 0, kind: input, shape index: {}, may-alias: {0,1}]   ;;  %s722_s1 = inlined_call_operand.vmem [shape: f32[2,8,256], index: 1, kind: input, shape index: {}, may-alias: {0,1}]   ;;  %s723_s2 = inlined_call_operand.vmem [shape: f32[8,24], index: 2, kind: input, shape index: {}]   ;;  %s724_s3 = inlined_call_operand.vmem [shape: f32[8,1], index: 3, kind: input, shape index: {}]   ;;  %s725_s4 = inlined_call_operand.hbm [shape: f32[2,8,16], index: 4, kind: output, shape index: {}]  }
   0x1   :  { %11 = vsyncpa [#allocation3 + $0x1], 0  ;;  %s615_s15 = smov 0   ;;  %s617_s16 = smov 0  }
   0x2   :  { %s619_s17 = smov 0   ;;  %s621_s18 = smov 0  }
   0x3   :  { %s623_s19 = smov 0   ;;  %s625_s20 = smov 0  }
   0x4 LB: > { %s418_s21 = sadd.s32 4294967295, %s585_s20   ;;  %s419_s22 = sadd.s32 4294967294, %s585_s20   ;;  %s585_s20 = sphi %s625_s20, %s17_s20   ;;  %s581_s19 = sphi %s623_s19, %s732_s19   ;;  %s577_s18 = sphi %s621_s18, %s731_s18   ;;  %s573_s17 = sphi %s619_s17, %s730_s17   ;;  %s569_s16 = sphi %s617_s16, %s729_s16   ;;  %s565_s15 = sphi %s615_s15, %s728_s15  }
   0x5   : > { %s29_s23 = sadd.s32 1, %s581_s19  ;;  %s138_s24 = sadd.s32 1, %s573_s17 }
   0x6   : > { %p31_p0 = scmp.ge.s32.totalorder %s29_s23, 2  ;;  %p148_p1 = scmp.ne.s32.totalorder %s573_s17, %s569_s16 }
   0x7   : > { %p149_p2 = scmp.eq.s32.totalorder %s418_s21, 1  ;;  %p154_p3 = scmp.ne.s32.totalorder %s569_s16, %s565_s15 }
   0x8   : > { %s734_s23 = smov (%p31_p0, %s29_s23), 0  ;;  %p155_p5 = scmp.eq.s32.totalorder %s419_s22, 1 }
   0x9   : > { %p655_p4 = por %p149_p2, %p148_p1  ;;  %s133_s26 = ssub.s32 %s581_s19, %s734_s23 }
   0xa   : > { %p422_p6 = scmp.ge.s32.totalorder %s585_s20, 1  ;;  %p136_p7 = scmp.eq.s32.totalorder %s133_s26, 0 }
   0xb   : > { %p662_p8 = por %p155_p5, %p154_p3  ;;  %p203_p9 = scmp.lt.s32.totalorder %s585_s20, 3 }
   0xc   : > { %s668_s28 = scalar_select %p136_p7, %s573_s17, %s138_s24  }
   0xd   : > { %p204_p10 = pnand %p422_p6, %p203_p9 }
   0xe   : > { %p241_p11 = scmp.lt.s32.totalorder (!%p204_p10), %s577_s18, 1  ;;  %s587_s12 = smov (!%p204_p10), 124  }
   0xf   : > { %207 = sbr.rel (%p204_p10) target bundleno = 288 (0x120), region = 36  ;;  %s588_s13 = smov (!%p204_p10), 126  }
  0x10   : > { %s238_s26 = sand.u32 (!%p204_p10), 1, %s569_s16   ;;  %s527_s21 = scalar_lea.hbm (!%p204_p10), %s725_s4, 16 }
  0x14   : > { %s242_s29 = scalar_select %p241_p11, %s577_s18, 1  ;;  %v278_v3 = vld [vmem:[%s724_s3] sm:$0xff]  ;;  %v589_v4 = vmov 0   ;;  %vm274_vm0 = vcmask 1014784   ;;  %vm267_vm1 = vcmask 1031168   ;;  %vm284_vm2 = vcmask 195584  }
  0x15   : > { %505 = vset.pattern.permute.xlu1 %v589_v4  ;;  %506 = vset.pattern.permute.xlu0 %v589_v4  ;;  %v277_v13 = vld [vmem:[%s723_s2] sm:$0xff] }
  0x16   : > { %s433_s30 = sshll.u32 %s242_s29, 4  ;;  %281 = vperm.xlu1 %505, %v278_v3   ;;  %s423_s29 = sshll.u32 %s238_s26, 3 }
  0x17   : > { %s248_s7 = scalar_lea.vmem %s721_s0, %s433_s30  ;;  %s435_s8 = sadd.s32 8, %s433_s30 }
  0x18   : > { %s257_s11 = scalar_lea.vmem %s722_s1, %s435_s8  ;;  %v259_v0 = vld [vmem:[%s248_s7] sm:$0xff]  ;;  %s430_s30 = sshll.u32 %s577_s18, 3 }
  0x19   : > { %v260_v1 = vld [vmem:[%s257_s11] sm:$0xff]  ;;  %s321_s7 = scalar_lea.hbm %s725_s4, %s430_s30  ;;  %s240_s8 = scalar_lea.vmem [#allocation2], %s423_s29 }
  0x1a   : > { %v495_v2 = vpack.i.bf16 %v260_v1, %v259_v0  ;;  %s323_s9 = sshll.u32 %s240_s8, 4  ;;  %s325_s10 = sshll.u32 %s321_s7, 4  ;;  %s324_s9 = int_to_ptr.vmem [resolvable:$true] %s323_s9  ;;  %s326_s10 = int_to_ptr.hbm [resolvable:$true] %s325_s10 }
  0x1b   : > { %s310_s11 = scalar_lea.sflag [#allocation3], %s238_s26 }
  0x1c   : > { %496 = vrot.lane.b32.xlu0 %v495_v2, %s587_s12  ;;  %s521_s12 = sshra.s32 %s326_s10, 4  ;;  %s522_s12 = int_to_ptr.hbm [resolvable:$true] %s521_s12 }
  0x1d   : > { %p528_p1 = scmp.lt.s32.totalorder %s522_s12, %s725_s4 }
  0x24   : > { %501 = vrot.lane.b32.xlu0 %v495_v2, %s588_s13  ;;  %s523_s13 = scalar_lea.hbm %s522_s12, 8 }
  0x25   : > { %p524_p12 = scmp.ne.s32.totalorder %s522_s12, %s523_s13  ;;  %p529_p2 = scmp.lt.s32.totalorder %s527_s21, %s523_s13 }
  0x27   : > { %p525_p13 = pnand %p524_p12, %p655_p4  ;;  %p530_p3 = por %p529_p2, %p528_p1 }
  0x29   : > { %p526_p0 = pneg %p525_p13 }
  0x2b   : > { %p531_p5 = pnand %p530_p3, %p526_p0 }
  0x88   : > { %v282_v14 = vpop.permute.xlu1 %281 }
  0x8e   : > { %v497_v5 = vpop.permute.xlu0 %496 }
  0x8f   : > { %v499_v6 = vunpack.i.h.bf16 %v497_v5  ;;  %v498_v7 = vunpack.i.l.bf16 %v497_v5 }
  0x91   : > { %v275_v8 = vsel %vm274_vm0, %v498_v7, %v499_v6 }
  0x92   : > { %301 = vmatpush.msra.mxu0 %v275_v8 }
  0x96   : > { %v502_v9 = vpop.permute.xlu0 %501 }
  0x97   : > { %v504_v10 = vunpack.i.h.bf16 %v502_v9  ;;  %v503_v11 = vunpack.i.l.bf16 %v502_v9 }
  0x99   : > { %v268_v12 = vsel %vm267_vm1, %v503_v11, %v504_v10 }
  0x9a   : > { %302 = vmatpush.msra.mxu0 %v268_v12 }
  0x9c   : > { %303 = vmatpush.msra.mxu0 %v259_v0 }
  0x9d   : > { %428 = vmatmul.msk.f32.vlgmr.msra.gmra.mxu0 %vm284_vm2, %v277_v13 }
 0x11a   : > { %v305_v15 = vpop.f32.mrf.mxu0 }
 0x11b   : > { %v306_v16 = vadd.f32 %v305_v15, %v282_v14 }
 0x11d   : > { %308 = vst [vmem:[%s240_s8] sm:$0xff] %v306_v16 }
 0x11e   : > { %534 = shalt.err (!%p531_p5)
}
 0x11f   : > { %437 = dma.vmem_to_hbm [thread:$0]  (%p655_p4), %s324_s9, 128, %s326_s10, %s310_s11  }
 0x120 PF: > { %p443_p6 = scmp.ge.s32.totalorder %s585_s20, 2  ;;  %s337_s26 = sand.u32 1, %s565_s15  }
 0x121   : > { %s338_s29 = scalar_lea.sflag [#allocation3], %s337_s26 }
 0x122   : > { %p440_p7 = pnand %p443_p6, %p662_p8 }
 0x124   : > { %p441_p9 = pneg %p440_p7 }
 0x126   : > { %560 = dma.done.wait (%p441_p9), %s338_s29, 128  }
 0x127   : > { %562 = vsyncadd (%p441_p9), %s338_s29, 4294967168  ;;  %s17_s20 = sadd.s32 1, %s585_s20   ;;  %s728_s15 = smov %s569_s16 }
 0x128   : > { %p14_p10 = scmp.ge.s32.totalorder %s17_s20, 4   ;;  %s729_s16 = smov %s573_s17 }
 0x129   : > { %s730_s17 = smov %s668_s28  ;;  %s731_s18 = smov %s581_s19 }
 0x12a   : > { %s732_s19 = smov %s734_s23  ;;  %16 = sbr.rel (!%p14_p10) target bundleno = 4 (0x4), region = 74 }
 0x12f   :  { %344 = vsyncpa [#allocation3], 1 }
 0x130   :  { %346 = vsyncpa [#allocation3 + $0x1], 1 }

</bundles_post_ra>
